<compile_context>
chip_gen: v6e
topology: v6e:2x2x1
jax: 0.10.0
libtpu: 0.0.40
codegen_flags: <defaults>
</compile_context>

<pallas_src>
import functools

import jax
import jax.numpy as jnp
from jax.experimental import pallas as pl
from jax.experimental.pallas import tpu as pltpu

SINKHORN_EPS = 0.05
SINKHORN_ITERS = 3


def _soft_cluster_kernel(z_ref, w_ref, loss_ref, *, tau):
    z = z_ref[...].astype(jnp.float32)   # [M, Fp]
    w = w_ref[...].astype(jnp.float32)   # [K, Fp]

    # F.normalize(x, p=2, dim=1): x / max(||x||_2, 1e-12); rsqrt -> EUP slot.
    def l2norm_rows(x):
        sumsq = jnp.sum(x * x, axis=1, keepdims=True)
        return x * jax.lax.rsqrt(jnp.maximum(sumsq, 1e-24))

    w_n = l2norm_rows(w)
    z_n = l2norm_rows(z)

    # zc_T = w_n @ z_n^T -> [K, M]   (bf16 MXU feed, f32 accumulate;
    # contraction on dim 1 of both operands -> no explicit transpose).
    zc_t = jax.lax.dot_general(
        w_n.astype(jnp.bfloat16), z_n.astype(jnp.bfloat16),
        dimension_numbers=(((1,), (1,)), ((), ())),
        preferred_element_type=jnp.float32)

    K = zc_t.shape[0]   # nmb_prototype
    M = zc_t.shape[1]   # B * N  (torch's "B" inside sinkhorn)
    inv_K = 1.0 / K
    inv_M = 1.0 / M

    # ---- sinkhorn(zc), already in torch's transposed layout:
    #      Q = exp(zc / eps).T == exp(zc_t / eps), shape [K, M] ----
    q_t = jnp.exp(zc_t * (1.0 / SINKHORN_EPS))       # f32, kept in f32 throughout
    q_t = q_t / jnp.sum(q_t)                          # exact global normalizer
    for it in range(SINKHORN_ITERS):
        row_sum = jnp.sum(q_t, axis=1, keepdims=True)     # [K, 1] over samples
        q_t = q_t * (pl.reciprocal(row_sum, approx=True) * inv_K)
        col_sum = jnp.sum(q_t, axis=0, keepdims=True)     # [1, M] over prototypes
        col_rcp = pl.reciprocal(col_sum, approx=True)
        if it + 1 < SINKHORN_ITERS:
            q_t = q_t * (col_rcp * inv_M)
        else:
            # Last "/ M" cancels exactly with sinkhorn's trailing "* M": skip both.
            q_t = q_t * col_rcp
    # q_t now equals sinkhorn(zc).T  -> [K, M]

    # ---- loss = -mean_i sum_k q * log_softmax(zc / tau, over K) ----
    logits = zc_t * (1.0 / tau)                        # [K, M]
    mx = jnp.max(logits, axis=0, keepdims=True)        # [1, M] (sublane reduce)
    lse = jnp.log(jnp.sum(jnp.exp(logits - mx), axis=0, keepdims=True)) + mx
    logp = logits - lse
    loss = -jnp.sum(q_t * logp) * inv_M

    loss_ref[0] = loss


def soft_cluster_forward(z, proto_w, tau=0.5):
    """JAX wrapper mirroring SoftClusterLayer.forward (poi_sim/dist_mat=None).

    Args:
      z: [B, N, T, D] (T*D == c_in*23) or [B, N, c_in*23], float32.
      proto_w: prototypes weight [nmb_prototype, c_in*23].
    Returns:
      (z reshaped to [B, N, c_in*23], scalar contrastive loss)
    """
    if z.ndim == 4:
        B, N, T, D = z.shape
        z = z.reshape(B, N, T * D)
    B, N, Fdim = z.shape
    M = B * N
    K = proto_w.shape[0]

    z_flat = z.reshape(M, Fdim).astype(jnp.float32)
    w = proto_w.astype(jnp.float32)

    # Zero-pad feature (lane) axis to a multiple of 128: exact for L2 norms and
    # dot products; removes the masked lane tail in the kernel.
    Fpad = ((Fdim + 127) // 128) * 128
    if Fpad != Fdim:
        z_in = jnp.pad(z_flat, ((0, 0), (0, Fpad - Fdim)))
        w_in = jnp.pad(w, ((0, 0), (0, Fpad - Fdim)))
    else:
        z_in, w_in = z_flat, w

    # Explicit VMEM budget (inputs + f32 intermediates), capped well under the
    # 64 MiB physical VMEM of v7x.
    in_bytes = 4 * (M * Fpad + K * Fpad)
    inter_bytes = 4 * (3 * M * Fpad + 8 * K * M)
    vmem_limit = int(min(max(2 * in_bytes + inter_bytes + (1 << 20), 8 << 20),
                         48 << 20))

    cost = pl.CostEstimate(
        flops=int(2 * M * K * Fpad + 6 * M * Fpad + 6 * K * Fpad + 30 * M * K),
        transcendentals=int(2 * M * K + M + K),
        bytes_accessed=int(in_bytes + 4),
    )

    kernel = functools.partial(_soft_cluster_kernel, tau=float(tau))
    loss = pl.pallas_call(
        kernel,
        out_shape=jax.ShapeDtypeStruct((1,), jnp.float32),
        in_specs=[
            pl.BlockSpec(memory_space=pltpu.MemorySpace.VMEM),
            pl.BlockSpec(memory_space=pltpu.MemorySpace.VMEM),
        ],
        out_specs=pl.BlockSpec(memory_space=pltpu.MemorySpace.SMEM),
        compiler_params=pltpu.CompilerParams(vmem_limit_bytes=vmem_limit),
        cost_estimate=cost,
    )(z_in, w_in)
    return z, loss[0]


if __name__ == "__main__":
    # Small shapes consistent with the module: d_model = c_in, T = 23.
    c_in = 4
    nmb_prototype = 8
    B, N, T, D = 2, 8, 23, c_in
    Fdim = c_in * 23

    key = jax.random.PRNGKey(0)
    k_z, k_w = jax.random.split(key)

    z = jax.random.normal(k_z, (B, N, T, D), dtype=jnp.float32)

    # Deterministic xavier_uniform-style init for prototypes weight [K, c_in*23].
    bound = (6.0 / (Fdim + nmb_prototype)) ** 0.5
    proto_w = jax.random.uniform(
        k_w, (nmb_prototype, Fdim), minval=-bound, maxval=bound,
        dtype=jnp.float32)

    z_out, loss = soft_cluster_forward(z, proto_w, tau=0.5)
    jax.block_until_ready((z_out, loss))
    assert bool(jnp.isfinite(loss)), "loss is not finite"
    print("KERNEL_OK")
</pallas_src>

<mosaic_0001>
module attributes {stable_mosaic.version = 11 : i64} {
  func.func @_soft_cluster_kernel(%arg0: memref<16x128xf32, #tpu.memory_space<vmem>>, %arg1: memref<8x128xf32, #tpu.memory_space<vmem>>, %arg2: memref<1xf32, #tpu.memory_space<smem>>) attributes {dimension_semantics = [], scalar_prefetch = 0 : i64, scratch_operands = 0 : i64, tpu.core_type = #tpu.core_type<tc>} {
    %c0 = arith.constant 0 : index
    %c0_0 = arith.constant 0 : index
    %0 = vector.load %arg0[%c0, %c0_0] : memref<16x128xf32, #tpu.memory_space<vmem>>, vector<16x128xf32>
    %c0_1 = arith.constant 0 : index
    %c0_2 = arith.constant 0 : index
    %1 = vector.load %arg1[%c0_1, %c0_2] : memref<8x128xf32, #tpu.memory_space<vmem>>, vector<8x128xf32>
    %2 = arith.mulf %1, %1 : vector<8x128xf32>
    %cst = arith.constant dense<0.000000e+00> : vector<8xf32>
    %3 = vector.multi_reduction <add>, %2, %cst [1] : vector<8x128xf32> to vector<8xf32>
    %4 = vector.shape_cast %3 : vector<8xf32> to vector<8x1xf32>
    %cst_3 = arith.constant 1.000000e-24 : f32
    %5 = vector.broadcast %cst_3 : f32 to vector<8x1xf32>
    %6 = arith.maximumf %4, %5 : vector<8x1xf32>
    %7 = math.rsqrt %6 : vector<8x1xf32>
    %8 = vector.broadcast %7 : vector<8x1xf32> to vector<8x128xf32>
    %9 = arith.mulf %1, %8 : vector<8x128xf32>
    %10 = arith.mulf %0, %0 : vector<16x128xf32>
    %cst_4 = arith.constant dense<0.000000e+00> : vector<16xf32>
    %11 = vector.multi_reduction <add>, %10, %cst_4 [1] : vector<16x128xf32> to vector<16xf32>
    %12 = vector.shape_cast %11 : vector<16xf32> to vector<16x1xf32>
    %cst_5 = arith.constant 1.000000e-24 : f32
    %13 = vector.broadcast %cst_5 : f32 to vector<16x1xf32>
    %14 = arith.maximumf %12, %13 : vector<16x1xf32>
    %15 = math.rsqrt %14 : vector<16x1xf32>
    %16 = vector.broadcast %15 : vector<16x1xf32> to vector<16x128xf32>
    %17 = arith.mulf %0, %16 : vector<16x128xf32>
    %18 = arith.truncf %9 : vector<8x128xf32> to vector<8x128xbf16>
    %19 = arith.truncf %17 : vector<16x128xf32> to vector<16x128xbf16>
    %cst_6 = arith.constant dense<0.000000e+00> : vector<8x16xf32>
    %20 = tpu.matmul %18, %19, %cst_6 {dimension_numbers = #tpu.dot_dimension_numbers<[1], [1], [0], [0], [0, 0, 1, 0], [], []>} : vector<8x128xbf16>, vector<16x128xbf16>, vector<8x16xf32> -> vector<8x16xf32>
    %cst_7 = arith.constant 2.000000e+01 : f32
    %21 = vector.broadcast %cst_7 : f32 to vector<8x16xf32>
    %22 = arith.mulf %20, %21 : vector<8x16xf32>
    %23 = math.exp %22 : vector<8x16xf32>
    %24 = vector.shape_cast %23 : vector<8x16xf32> to vector<1x8x16xf32>
    %cst_8 = arith.constant dense<0.000000e+00> : vector<1xf32>
    %25 = vector.multi_reduction <add>, %24, %cst_8 [1, 2] : vector<1x8x16xf32> to vector<1xf32>
    %26 = vector.shape_cast %25 : vector<1xf32> to vector<1x1x1xf32>
    %27 = vector.extract %26[0, 0, 0] : f32 from vector<1x1x1xf32>
    %28 = vector.broadcast %27 : f32 to vector<8x16xf32>
    %29 = arith.divf %23, %28 : vector<8x16xf32>
    %cst_9 = arith.constant dense<0.000000e+00> : vector<8xf32>
    %30 = vector.multi_reduction <add>, %29, %cst_9 [1] : vector<8x16xf32> to vector<8xf32>
    %31 = vector.shape_cast %30 : vector<8xf32> to vector<8x1xf32>
    %32 = tpu.reciprocal %31 {approx = true} : vector<8x1xf32> -> vector<8x1xf32>
    %cst_10 = arith.constant 1.250000e-01 : f32
    %33 = vector.broadcast %cst_10 : f32 to vector<8x1xf32>
    %34 = arith.mulf %32, %33 : vector<8x1xf32>
    %35 = vector.broadcast %34 : vector<8x1xf32> to vector<8x16xf32>
    %36 = arith.mulf %29, %35 : vector<8x16xf32>
    %cst_11 = arith.constant dense<0.000000e+00> : vector<16xf32>
    %37 = vector.multi_reduction <add>, %36, %cst_11 [0] : vector<8x16xf32> to vector<16xf32>
    %38 = vector.shape_cast %37 : vector<16xf32> to vector<1x16xf32>
    %39 = tpu.reciprocal %38 {approx = true} : vector<1x16xf32> -> vector<1x16xf32>
    %cst_12 = arith.constant 6.250000e-02 : f32
    %40 = vector.broadcast %cst_12 : f32 to vector<1x16xf32>
    %41 = arith.mulf %39, %40 : vector<1x16xf32>
    %42 = vector.broadcast %41 : vector<1x16xf32> to vector<8x16xf32>
    %43 = arith.mulf %36, %42 : vector<8x16xf32>
    %cst_13 = arith.constant dense<0.000000e+00> : vector<8xf32>
    %44 = vector.multi_reduction <add>, %43, %cst_13 [1] : vector<8x16xf32> to vector<8xf32>
    %45 = vector.shape_cast %44 : vector<8xf32> to vector<8x1xf32>
    %46 = tpu.reciprocal %45 {approx = true} : vector<8x1xf32> -> vector<8x1xf32>
    %cst_14 = arith.constant 1.250000e-01 : f32
    %47 = vector.broadcast %cst_14 : f32 to vector<8x1xf32>
    %48 = arith.mulf %46, %47 : vector<8x1xf32>
    %49 = vector.broadcast %48 : vector<8x1xf32> to vector<8x16xf32>
    %50 = arith.mulf %43, %49 : vector<8x16xf32>
    %cst_15 = arith.constant dense<0.000000e+00> : vector<16xf32>
    %51 = vector.multi_reduction <add>, %50, %cst_15 [0] : vector<8x16xf32> to vector<16xf32>
    %52 = vector.shape_cast %51 : vector<16xf32> to vector<1x16xf32>
    %53 = tpu.reciprocal %52 {approx = true} : vector<1x16xf32> -> vector<1x16xf32>
    %cst_16 = arith.constant 6.250000e-02 : f32
    %54 = vector.broadcast %cst_16 : f32 to vector<1x16xf32>
    %55 = arith.mulf %53, %54 : vector<1x16xf32>
    %56 = vector.broadcast %55 : vector<1x16xf32> to vector<8x16xf32>
    %57 = arith.mulf %50, %56 : vector<8x16xf32>
    %cst_17 = arith.constant dense<0.000000e+00> : vector<8xf32>
    %58 = vector.multi_reduction <add>, %57, %cst_17 [1] : vector<8x16xf32> to vector<8xf32>
    %59 = vector.shape_cast %58 : vector<8xf32> to vector<8x1xf32>
    %60 = tpu.reciprocal %59 {approx = true} : vector<8x1xf32> -> vector<8x1xf32>
    %cst_18 = arith.constant 1.250000e-01 : f32
    %61 = vector.broadcast %cst_18 : f32 to vector<8x1xf32>
    %62 = arith.mulf %60, %61 : vector<8x1xf32>
    %63 = vector.broadcast %62 : vector<8x1xf32> to vector<8x16xf32>
    %64 = arith.mulf %57, %63 : vector<8x16xf32>
    %cst_19 = arith.constant dense<0.000000e+00> : vector<16xf32>
    %65 = vector.multi_reduction <add>, %64, %cst_19 [0] : vector<8x16xf32> to vector<16xf32>
    %66 = vector.shape_cast %65 : vector<16xf32> to vector<1x16xf32>
    %67 = tpu.reciprocal %66 {approx = true} : vector<1x16xf32> -> vector<1x16xf32>
    %68 = vector.broadcast %67 : vector<1x16xf32> to vector<8x16xf32>
    %69 = arith.mulf %64, %68 : vector<8x16xf32>
    %cst_20 = arith.constant 2.000000e+00 : f32
    %70 = vector.broadcast %cst_20 : f32 to vector<8x16xf32>
    %71 = arith.mulf %20, %70 : vector<8x16xf32>
    %cst_21 = arith.constant dense<0xFF800000> : vector<16xf32>
    %72 = vector.multi_reduction <maximumf>, %71, %cst_21 [0] : vector<8x16xf32> to vector<16xf32>
    %73 = vector.shape_cast %72 : vector<16xf32> to vector<1x16xf32>
    %74 = vector.broadcast %73 : vector<1x16xf32> to vector<8x16xf32>
    %75 = arith.subf %71, %74 : vector<8x16xf32>
    %76 = math.exp %75 : vector<8x16xf32>
    %cst_22 = arith.constant dense<0.000000e+00> : vector<16xf32>
    %77 = vector.multi_reduction <add>, %76, %cst_22 [0] : vector<8x16xf32> to vector<16xf32>
    %78 = vector.shape_cast %77 : vector<16xf32> to vector<1x16xf32>
    %79 = math.log %78 : vector<1x16xf32>
    %80 = arith.addf %79, %73 : vector<1x16xf32>
    %81 = vector.broadcast %80 : vector<1x16xf32> to vector<8x16xf32>
    %82 = arith.subf %71, %81 : vector<8x16xf32>
    %83 = arith.mulf %69, %82 : vector<8x16xf32>
    %84 = vector.shape_cast %83 : vector<8x16xf32> to vector<1x8x16xf32>
    %cst_23 = arith.constant dense<0.000000e+00> : vector<1xf32>
    %85 = vector.multi_reduction <add>, %84, %cst_23 [1, 2] : vector<1x8x16xf32> to vector<1xf32>
    %86 = vector.shape_cast %85 : vector<1xf32> to vector<1x1x1xf32>
    %87 = vector.extract %86[0, 0, 0] : f32 from vector<1x1x1xf32>
    %cst_24 = arith.constant 0.000000e+00 : f32
    %88 = arith.subf %cst_24, %87 : f32
    %cst_25 = arith.constant 6.250000e-02 : f32
    %89 = arith.mulf %88, %cst_25 : f32
    %c0_26 = arith.constant 0 : index
    %90 = memref.load %arg2[%c0_26] : memref<1xf32, #tpu.memory_space<smem>>
    memref.store %89, %arg2[%c0_26] : memref<1xf32, #tpu.memory_space<smem>>
    return
  }
}

</mosaic_0001>

<bundles_post_ra>
// kernel: tpu_custom_call.1
= control target key start
LH: loop header
LB: loop body
LE: loop exit
PB: predicated region body
PF: predicated region fallthrough
CT: control target
= control target key end

     0   :  { %7 = vsyncpa [#allocation3], 0  ;;  %s358_s0 = inlined_call_operand.hbm [shape: f32[16,128], index: 0, kind: input, shape index: {}]   ;;  %s359_s1 = inlined_call_operand.hbm [shape: f32[8,128], index: 1, kind: input, shape index: {}]   ;;  %s360_s2 = inlined_call_operand.hbm [shape: f32[1], index: 2, kind: output, shape index: {}]  }
   0x1   :  { %8 = vsyncpa [#allocation6], 0 }
   0x2   :  { %9 = vsyncpa [#allocation4], 0  ;;  %s317_s9 = smov [#allocation2]  }
   0x3   :  { %s15_s10 = sshll.u32 %s317_s9, 4  ;;  %s16_s10 = int_to_ptr.vmem [resolvable:$true] %s15_s10 }
   0x4   :  { %s271_s11 = scalar_lea.vmem %s16_s10, 256  ;;  %p276_p1 = scmp.lt.s32.totalorder %s16_s10, %s16_s10 }
   0x5   :  { %p272_p0 = scmp.ne.s32.totalorder %s16_s10, %s271_s11  ;;  %p277_p2 = scmp.lt.s32.totalorder %s271_s11, %s271_s11 }
   0x7   :  { %p278_p3 = por %p277_p2, %p276_p1 }
   0x9   :  { %p279_p4 = pnand %p278_p3, %p272_p0 }
   0xb   :  { %282 = shalt.err (!%p279_p4)
}
   0xc   :  { %s318_s12 = smov 128   ;;  %s319_s13 = smov 8  }
   0xd   :  { %21 = dma.hbm_to_vmem [thread:$0]  %s358_s0, 256, %s16_s10, [#allocation3], %s318_s12, %s318_s12, %s319_s13  }
   0xe   :  { %s320_s16 = smov [#allocation5]  }
   0xf   :  { %s28_s17 = sshll.u32 %s320_s16, 4  ;;  %s29_s17 = int_to_ptr.vmem [resolvable:$true] %s28_s17 }
  0x10   :  { %s291_s18 = scalar_lea.vmem %s29_s17, 128  ;;  %p296_p6 = scmp.lt.s32.totalorder %s29_s17, %s29_s17 }
  0x11   :  { %p292_p5 = scmp.ne.s32.totalorder %s29_s17, %s291_s18  ;;  %p297_p7 = scmp.lt.s32.totalorder %s291_s18, %s291_s18 }
  0x13   :  { %p298_p8 = por %p297_p7, %p296_p6 }
  0x15   :  { %p299_p9 = pnand %p298_p8, %p292_p5 }
  0x17   :  { %302 = shalt.err (!%p299_p9)
}
  0x18   :  { %31 = dma.hbm_to_vmem [thread:$0]  %s359_s1, 128, %s29_s17, [#allocation6]  }
  0x19   :  { %311 = dma.done.wait [#allocation3], 256  }
  0x1a   :  { %312 = vsyncadd [#allocation3], 4294967040 }
  0x1b   :  { %313 = dma.done.wait [#allocation6], 128  }
  0x1c   :  { %314 = vsyncadd [#allocation6], 4294967168  ;;  %v39_v0 = vld [vmem:[#allocation2] sm:$0xff]  ;;  %v40_v1 = vld [vmem:[#allocation2 + $0x8] sm:$0xff]  ;;  %v321_v6 = vmov 0.0   ;;  %vm322_vm0 = vmmov 0  }
  0x1d   :  { %v41_v2 = vld [vmem:[#allocation5] sm:$0xff]  ;;  %v48_v3 = vmul.f32 %v39_v0, %v39_v0  ;;  %v49_v5 = vmul.f32 %v40_v1, %v40_v1  ;;  %220 = vmatprep.subr.bf16.mxu0 %v321_v6  ;;  %222 = vmatprep.mubr.msk.bf16.mxu0 %vm322_vm0, %v321_v6  ;;  %vm105_vm1 = vcmask 130048   ;;  %s323_s23 = smov [#allocation7]  }
  0x1e   :  { %v42_v4 = vmul.f32 %v41_v2, %v41_v2 }
  0x1f   :  { %50 = vadd.xlane.f32.xlu0 %v48_v3 }
  0x20   :  { %43 = vadd.xlane.f32.xlu1 %v42_v4 }
  0x23   :  { %52 = vadd.xlane.f32.xlu0 %v49_v5 }
  0xa8   :  { %v51_v7 = vpop.xlane.xlu0 %50 }
  0xa9   :  { %v54_v8 = vmax.f32 %v51_v7, 1e-24  ;;  %v44_v9 = vpop.xlane.xlu1 %43 }
  0xaa   :  { %v45_v11 = vmax.f32 %v44_v9, 1e-24 }
  0xab   :  { %237 = vrsqrt.f32 %v54_v8 }
  0xac   :  { %v53_v10 = vpop.xlane.xlu0 %52 }
  0xad   :  { %v55_v12 = vmax.f32 %v53_v10, 1e-24 }
  0xaf   :  { %239 = vrsqrt.f32 %v55_v12 }
  0xb0   :  { %241 = vrsqrt.f32 %v45_v11 }
  0xb8   :  { %v238_v13 = vpop.eup %237 }
  0xb9   :  { %v58_v16 = vmul.f32 %v238_v13, %v39_v0 }
  0xbc   :  { %v240_v14 = vpop.eup %239 }
  0xbd   :  { %v242_v15 = vpop.eup %241  ;;  %v59_v17 = vmul.f32 %v240_v14, %v40_v1 }
  0xbe   :  { %v47_v19 = vmul.f32 %v242_v15, %v41_v2 }
  0xbf   :  { %v61_v18 = vpack.c.bf16 %v59_v17, %v58_v16 }
  0xc0   :  { %v60_v20 = vpack.c.bf16 %v47_v19, %v47_v19 }
  0xc1   :  { %221 = vmatpush3.bf16.xpose.msra.mxu0 %v61_v18 }
  0xc8   :  { %223 = vmatmul.mubr.bf16.vlgmr.msra.gmra.mxu0 %v60_v20 }
 0x188   :  { %v96_v21 = vpop.f32.mrf.mxu0 }
 0x189   :  { %v102_v22 = vmul.f32 20.0, %v96_v21  ;;  %v166_v6 = vmul.f32 2.0, %v96_v21 }
 0x18a   :  { %v224_v23 = vpop.f32.mrf.mxu0 }
 0x18b   :  { %v103_v24 = vmul.f32 1.442695, %v102_v22  ;;  %v167_v7 = vsel %vm105_vm1, %v166_v6, -inf }
 0x18c   :  { %v99_v25 = vpop.f32.mrf.mxu0  ;;  %v168_v8 = vrot.slane %v167_v7, 4 }
 0x18d   :  { %243 = vpow2.f32 %v103_v24 }
 0x18e   :  { %v225_v26 = vpop.f32.mrf.mxu0  ;;  %v169_v9 = vmax.f32 %v167_v7, %v168_v8 }
 0x190   :  { %v170_v10 = vrot.slane %v169_v9, 2 }
 0x192   :  { %v171_v11 = vmax.f32 %v169_v9, %v170_v10 }
 0x194   :  { %v172_v12 = vrot.slane %v171_v11, 1 }
 0x196   :  { %v173_v13 = vmax.f32 %v171_v11, %v172_v12 }
 0x198   :  { %v174_v14 = vsub.f32 %v166_v6, %v173_v13 }
 0x19a   :  { %v244_v27 = vpop.eup %243  ;;  %v175_v15 = vmul.f32 1.442695, %v174_v14 }
 0x19b   :  { %v106_v28 = vsel %vm105_vm1, %v244_v27, 0.0 }
 0x19c   :  { %107 = vadd.xlane.f32.xlu1 %v106_v28 }
 0x225   :  { %v108_v29 = vpop.xlane.xlu1 %107 }
 0x226   :  { %v109_v30 = vrot.slane %v108_v29, 4 }
 0x228   :  { %v110_v31 = vadd.f32 %v109_v30, %v108_v29 }
 0x22a   :  { %v111_v32 = vrot.slane %v110_v31, 2 }
 0x22c   :  { %v112_v33 = vadd.f32 %v111_v32, %v110_v31 }
 0x22e   :  { %v113_v34 = vrot.slane %v112_v33, 1 }
 0x230   :  { %v114_v35 = vadd.f32 %v113_v34, %v112_v33 }
 0x232   :  { %226 = vpush %v114_v35 }
 0x263   :  { %s227_s0 = spop %226 }
 0x264   :  { %v116_v36 = vstv %s227_s0 }
 0x265   :  { %245 = vrcp.f32 %v116_v36 }
 0x272   :  { %v246_v37 = vpop.eup %245 }
 0x273   :  { %v118_v38 = vmul.f32 %v246_v37, %v244_v27 }
 0x275   :  { %v119_v39 = vsel %vm105_vm1, %v118_v38, 0.0 }
 0x276   :  { %120 = vadd.xlane.f32.xlu0 %v119_v39 }
 0x2ff   :  { %v121_v40 = vpop.xlane.xlu0 %120 }
 0x300   :  { %247 = vrcp.f32 %v121_v40 }
 0x30d   :  { %v248_v41 = vpop.eup %247 }
 0x30e   :  { %v123_v42 = vmul.f32 0.125, %v248_v41 }
 0x310   :  { %v124_v43 = vmul.f32 %v123_v42, %v118_v38 }
 0x312   :  { %v125_v44 = vsel %vm105_vm1, %v124_v43, 0.0 }
 0x313   :  { %v126_v45 = vrot.slane %v125_v44, 4 }
 0x315   :  { %v127_v46 = vadd.f32 %v126_v45, %v125_v44 }
 0x317   :  { %v128_v47 = vrot.slane %v127_v46, 2 }
 0x319   :  { %v129_v48 = vadd.f32 %v128_v47, %v127_v46 }
 0x31b   :  { %v130_v49 = vrot.slane %v129_v48, 1 }
 0x31d   :  { %v131_v50 = vadd.f32 %v130_v49, %v129_v48 }
 0x31f   :  { %249 = vrcp.f32 %v131_v50 }
 0x32c   :  { %v250_v51 = vpop.eup %249 }
 0x32d   :  { %v133_v52 = vmul.f32 0.0625, %v250_v51 }
 0x32f   :  { %v134_v53 = vmul.f32 %v133_v52, %v124_v43 }
 0x331   :  { %v135_v54 = vsel %vm105_vm1, %v134_v53, 0.0 }
 0x332   :  { %136 = vadd.xlane.f32.xlu1 %v135_v54 }
 0x3bb   :  { %v137_v55 = vpop.xlane.xlu1 %136 }
 0x3bc   :  { %251 = vrcp.f32 %v137_v55 }
 0x3c9   :  { %v252_v56 = vpop.eup %251 }
 0x3ca   :  { %v139_v57 = vmul.f32 0.125, %v252_v56 }
 0x3cc   :  { %v140_v58 = vmul.f32 %v139_v57, %v134_v53 }
 0x3ce   :  { %v141_v59 = vsel %vm105_vm1, %v140_v58, 0.0 }
 0x3cf   :  { %v142_v60 = vrot.slane %v141_v59, 4 }
 0x3d1   :  { %v143_v61 = vadd.f32 %v142_v60, %v141_v59 }
 0x3d3   :  { %v144_v62 = vrot.slane %v143_v61, 2 }
 0x3d5   :  { %v145_v63 = vadd.f32 %v144_v62, %v143_v61 }
 0x3d7   :  { %v146_v0 = vrot.slane %v145_v63, 1 }
 0x3d9   :  { %v147_v1 = vadd.f32 %v146_v0, %v145_v63 }
 0x3db   :  { %253 = vrcp.f32 %v147_v1 }
 0x3dc   :  { %255 = vpow2.f32 %v175_v15 }
 0x3e8   :  { %v254_v2 = vpop.eup %253 }
 0x3e9   :  { %v149_v3 = vmul.f32 0.0625, %v254_v2  ;;  %v256_v16 = vpop.eup %255 }
 0x3ea   :  { %v177_v17 = vsel %vm105_vm1, %v256_v16, 0.0 }
 0x3eb   :  { %v150_v4 = vmul.f32 %v149_v3, %v140_v58  ;;  %v178_v18 = vrot.slane %v177_v17, 4 }
 0x3ed   :  { %v151_v5 = vsel %vm105_vm1, %v150_v4, 0.0  ;;  %v179_v20 = vadd.f32 %v178_v18, %v177_v17 }
 0x3ee   :  { %152 = vadd.xlane.f32.xlu0 %v151_v5 }
 0x3ef   :  { %v180_v22 = vrot.slane %v179_v20, 2 }
 0x3f1   :  { %v181_v21 = vadd.f32 %v180_v22, %v179_v20 }
 0x3f3   :  { %v182_v24 = vrot.slane %v181_v21, 1 }
 0x3f5   :  { %v183_v27 = vadd.f32 %v182_v24, %v181_v21 }
 0x477   :  { %v153_v19 = vpop.xlane.xlu0 %152 }
 0x478   :  { %257 = vrcp.f32 %v153_v19 }
 0x479   :  { %259 = vlog2.f32 %v183_v27 }
 0x485   :  { %v258_v23 = vpop.eup %257 }
 0x486   :  { %v155_v25 = vmul.f32 0.125, %v258_v23  ;;  %v260_v35 = vpop.eup %259 }
 0x487   :  { %v185_v36 = vmul.f32 0.6931472, %v260_v35 }
 0x488   :  { %v156_v26 = vmul.f32 %v155_v25, %v150_v4 }
 0x489   :  { %v186_v37 = vadd.f32 %v185_v36, %v173_v13 }
 0x48a   :  { %v157_v28 = vsel %vm105_vm1, %v156_v26, 0.0 }
 0x48b   :  { %v158_v29 = vrot.slane %v157_v28, 4  ;;  %v187_v40 = vsub.f32 %v166_v6, %v186_v37 }
 0x48d   :  { %v159_v30 = vadd.f32 %v158_v29, %v157_v28 }
 0x48f   :  { %v160_v31 = vrot.slane %v159_v30, 2 }
 0x491   :  { %v161_v32 = vadd.f32 %v160_v31, %v159_v30 }
 0x493   :  { %v162_v33 = vrot.slane %v161_v32, 1 }
 0x495   :  { %v163_v34 = vadd.f32 %v162_v33, %v161_v32 }
 0x497   :  { %261 = vrcp.f32 %v163_v34 }
 0x4a4   :  { %v262_v38 = vpop.eup %261 }
 0x4a5   :  { %v165_v39 = vmul.f32 %v262_v38, %v156_v26 }
 0x4a7   :  { %v188_v41 = vmul.f32 %v187_v40, %v165_v39 }
 0x4a9   :  { %v189_v42 = vsel %vm105_vm1, %v188_v41, 0.0 }
 0x4aa   :  { %190 = vadd.xlane.f32.xlu1 %v189_v42 }
 0x533   :  { %v191_v43 = vpop.xlane.xlu1 %190 }
 0x534   :  { %v192_v44 = vrot.slane %v191_v43, 4 }
 0x536   :  { %v193_v45 = vadd.f32 %v192_v44, %v191_v43 }
 0x538   :  { %v194_v46 = vrot.slane %v193_v45, 2 }
 0x53a   :  { %v195_v47 = vadd.f32 %v194_v46, %v193_v45 }
 0x53c   :  { %v196_v48 = vrot.slane %v195_v47, 1 }
 0x53e   :  { %v197_v49 = vadd.f32 %v196_v48, %v195_v47 }
 0x540   :  { %228 = vpush %v197_v49 }
 0x571   :  { %s229_s1 = spop %228 }
 0x572   :  { %s199_s21 = ssub.f32 0.0, %s229_s1 }
 0x574   :  { %s200_s22 = smul.f32 0.0625, %s199_s21 }
 0x576   :  { %202 = sst [smem:[#allocation7]] %s200_s22 }
 0x577   :  { %210 = dma.smem_to_hbm %s323_s23, 16, %s360_s2, [#allocation4]  }
 0x578   :  { %315 = dma.done.wait [#allocation4], 16  }
 0x579   :  { %316 = vsyncadd [#allocation4], 4294967280 }
 0x57a   :  { %214 = sfence }
 0x57b   :  { %215 = vsyncpa [#allocation3], 1 }
 0x57c   :  { %216 = vsyncpa [#allocation6], 1 }
 0x57d   :  { %217 = vsyncpa [#allocation4], 1 }

</bundles_post_ra>
